<compile_context>
chip_gen: v7x
topology: tpu7x:2x2x1
jax: 0.10.0
libtpu: 0.0.40
codegen_flags: <defaults>
</compile_context>

<pallas_src>
import functools

import jax
import jax.numpy as jnp
from jax.experimental import pallas as pl
from jax.experimental.pallas import tpu as pltpu


def _round_up(v, m):
    return (v + m - 1) // m * m


def _gcn_fused_kernel(x_ref, adj_ref, p_ref, o_ref, *, layer_meta, scalar_out):
    """Entire GCN forward, fully resident in VMEM.

    x_ref: (N, F_in) f32; adj_ref: (N, N) f32; p_ref: packed (rows, 128) f32
    parameter slab; o_ref: (1, N) f32 if scalar_out else (N, dim_out) f32.
    layer_meta: static tuple of (w_row, f_in, f_out, b_row) slab offsets.
    """

    def mxu(a, b):
        # bf16 MXU matmul with f32 accumulation; casts are in-kernel (free-ish).
        return jnp.dot(a.astype(jnp.bfloat16), b.astype(jnp.bfloat16),
                       preferred_element_type=jnp.float32)

    adj = adj_ref[...]          # (N, N) f32
    x = x_ref[...]              # (N, F_in) f32
    n = adj.shape[0]

    # Hidden hops: x = ReLU(adj @ (x @ W) + b); association chosen per shapes
    # (size-gated micro-opt only -- one MXU pass either way at these shapes).
    for (wr, fi, fo, br) in layer_meta[:-1]:
        w = p_ref[wr:wr + fi, 0:fo]          # (fi, fo) f32, static slice
        b = p_ref[br:br + 1, 0:fo]           # (1, fo)  f32
        if fo > fi:
            h = mxu(mxu(adj, x), w)
        else:
            h = mxu(adj, mxu(x, w))
        x = jnp.maximum(h + b, 0.0)          # bias + ReLU in f32

    # Output layer (out_gcn) + fused final out_act ReLU.
    wr, fi, fo, br = layer_meta[-1]
    if scalar_out:
        # dim_out == 1: keep the 1-wide projection OFF the MXU.  adj @ x is a
        # lane-dense MXU matmul; the projection is a VPU multiply + XLU
        # row-reduction.  w is stored in the slab as a (1, H) row.
        w_row = p_ref[wr:wr + 1, 0:fi]                        # (1, H) f32
        b_last = p_ref[br:br + 1, 0:1]                        # (1, 1) f32
        ax = mxu(adj, x)                                      # (N, H) f32
        z_col = jnp.sum(ax * w_row, axis=-1, keepdims=True)   # (N, 1) f32
        # Move the per-node scalars from sublanes onto lanes without any
        # transpose/reshape relayout: scatter onto a diagonal mask and reduce
        # across sublanes -> lane-dense (1, N) output row.
        ri = jax.lax.broadcasted_iota(jnp.int32, (n, n), 0)
        ci = jax.lax.broadcasted_iota(jnp.int32, (n, n), 1)
        diag = jnp.where(ri == ci, z_col, 0.0)                # (N, N)
        z_row = jnp.sum(diag, axis=0, keepdims=True)          # (1, N)
        o_ref[...] = jnp.maximum(z_row + b_last, 0.0).astype(o_ref.dtype)
    else:
        w = p_ref[wr:wr + fi, 0:fo]
        b = p_ref[br:br + 1, 0:fo]
        if fo > fi:
            z = mxu(mxu(adj, x), w) + b
        else:
            z = mxu(adj, mxu(x, w)) + b
        o_ref[...] = jnp.maximum(z, 0.0).astype(o_ref.dtype)  # out_act


def pack_gcn_params(params, lane_width=128):
    """One-time packing of all (W, b) pairs into a single f32 VMEM slab.

    Each W starts at an 8-row-aligned offset; its bias row follows in the next
    8-row block.  For a scalar output layer (dim_out == 1) the last W is
    stored transposed as a single (1, H) row for the in-kernel VPU/XLU path.
    Returns (slab, layer_meta, scalar_out).
    """
    num_layers = len(params)
    w_last, _ = params[-1]
    scalar_out = (w_last.shape[1] == 1)

    meta = []
    entries = []
    rows = 0
    for i, (w, b) in enumerate(params):
        fi, fo = int(w.shape[0]), int(w.shape[1])
        if i == num_layers - 1 and scalar_out:
            w_put = jnp.asarray(w, jnp.float32).T       # (1, H) row
        else:
            w_put = jnp.asarray(w, jnp.float32)         # (fi, fo)
        wr = rows
        rows += _round_up(w_put.shape[0], 8)
        br = rows
        rows += 8
        entries.append((wr, w_put))
        entries.append((br, jnp.asarray(b, jnp.float32).reshape(1, -1)))
        meta.append((wr, fi, fo, br))

    slab = jnp.zeros((rows, lane_width), jnp.float32)
    for r, a in entries:
        slab = slab.at[r:r + a.shape[0], 0:a.shape[1]].set(a)
    return slab, tuple(meta), scalar_out


def gcn_forward(x, adj, slab, layer_meta, scalar_out):
    """Fused GCN forward. Matches GCN.forward: num_hops (GCN+ReLU) layers,
    out_gcn, squeeze(-1) if last dim == 1, final ReLU."""
    n = x.shape[0]
    dim_out = layer_meta[-1][2]

    if scalar_out:
        out_shape = jax.ShapeDtypeStruct((1, n), jnp.float32)   # lane-dense row
    else:
        out_shape = jax.ShapeDtypeStruct((n, dim_out), jnp.float32)

    # Advisory cost estimate: 2*(N*Fi*Fo + N*N*Fo) flops per layer.
    flops = 0
    for (_, fi, fo, _) in layer_meta:
        flops += 2 * (n * fi * fo + n * n * fo)
    bytes_accessed = (int(x.size) * x.dtype.itemsize
                      + int(adj.size) * adj.dtype.itemsize
                      + int(slab.size) * slab.dtype.itemsize
                      + n * dim_out * 4)
    cost = pl.CostEstimate(flops=int(flops), transcendentals=0,
                           bytes_accessed=int(bytes_accessed))

    kernel = functools.partial(_gcn_fused_kernel,
                               layer_meta=tuple(layer_meta),
                               scalar_out=scalar_out)
    out = pl.pallas_call(
        kernel,
        out_shape=out_shape,
        grid=(),
        in_specs=[pl.BlockSpec(memory_space=pltpu.VMEM)] * 3,
        out_specs=pl.BlockSpec(memory_space=pltpu.VMEM),
        cost_estimate=cost,
    )(x, adj, slab)

    if scalar_out:
        # (1, N) -> (N,): metadata-only reshape (same linear layout), no slice.
        out = out.reshape(n)
    return out


def init_gcn_params(key, dim_in, dim_hidden, dim_out, num_hops):
    """Deterministic uniform init (pygcn-style: U(-1/sqrt(fan_out), 1/sqrt(fan_out)))."""
    params = []
    _in, _out = dim_in, dim_hidden
    dims = []
    for _ in range(num_hops):
        dims.append((_in, _out))
        _in, _out = _out, _out
    dims.append((_in, dim_out))  # out_gcn
    for (fi, fo) in dims:
        key, kw, kb = jax.random.split(key, 3)
        stdv = 1.0 / jnp.sqrt(jnp.float32(fo))
        w = jax.random.uniform(kw, (fi, fo), jnp.float32, -stdv, stdv)
        b = jax.random.uniform(kb, (1, fo), jnp.float32, -stdv, stdv)
        params.append((w, b))
    return params


if __name__ == "__main__":
    key = jax.random.PRNGKey(0)
    num_nodes = 8
    dim_in = 16
    dim_hidden = 32
    dim_out = 1
    num_hops = 2

    k_x, k_adj, k_p = jax.random.split(key, 3)
    x = jax.random.normal(k_x, (num_nodes, dim_in), jnp.float32)

    # Build a symmetric, self-looped, row-normalized adjacency.
    a = (jax.random.uniform(k_adj, (num_nodes, num_nodes)) > 0.5).astype(jnp.float32)
    a = jnp.maximum(a, a.T) + jnp.eye(num_nodes, dtype=jnp.float32)
    adj = a / jnp.sum(a, axis=1, keepdims=True)

    params = init_gcn_params(k_p, dim_in, dim_hidden, dim_out, num_hops)
    slab, layer_meta, scalar_out = pack_gcn_params(params)   # one-time packing

    out = gcn_forward(x, adj, slab, layer_meta, scalar_out)
    out = jax.block_until_ready(out)
    assert out.shape == (num_nodes,), out.shape
    print("KERNEL_OK")
</pallas_src>

<mosaic_0001>
module attributes {stable_mosaic.version = 11 : i64} {
  func.func @_gcn_fused_kernel(%arg0: memref<8x16xf32, #tpu.memory_space<vmem>>, %arg1: memref<8x8xf32, #tpu.memory_space<vmem>>, %arg2: memref<80x128xf32, #tpu.memory_space<vmem>>, %arg3: memref<1x8xf32, #tpu.memory_space<vmem>>) attributes {dimension_semantics = [], scalar_prefetch = 0 : i64, scratch_operands = 0 : i64, tpu.core_type = #tpu.core_type<tc>} {
    %c0 = arith.constant 0 : index
    %c0_0 = arith.constant 0 : index
    %0 = vector.load %arg1[%c0, %c0_0] : memref<8x8xf32, #tpu.memory_space<vmem>>, vector<8x8xf32>
    %c0_1 = arith.constant 0 : index
    %c0_2 = arith.constant 0 : index
    %1 = vector.load %arg0[%c0_1, %c0_2] : memref<8x16xf32, #tpu.memory_space<vmem>>, vector<8x16xf32>
    %c0_3 = arith.constant 0 : index
    %c0_4 = arith.constant 0 : index
    %2 = vector.load %arg2[%c0_3, %c0_4] : memref<80x128xf32, #tpu.memory_space<vmem>>, vector<16x32xf32>
    %c16 = arith.constant 16 : index
    %c0_5 = arith.constant 0 : index
    %3 = vector.load %arg2[%c16, %c0_5] : memref<80x128xf32, #tpu.memory_space<vmem>>, vector<1x32xf32>
    %4 = arith.truncf %0 : vector<8x8xf32> to vector<8x8xbf16>
    %5 = arith.truncf %1 : vector<8x16xf32> to vector<8x16xbf16>
    %cst = arith.constant dense<0.000000e+00> : vector<8x16xf32>
    %6 = tpu.matmul %4, %5, %cst {dimension_numbers = #tpu.dot_dimension_numbers<[1], [0], [0], [1], [0, 0, 1, 1], [], []>} : vector<8x8xbf16>, vector<8x16xbf16>, vector<8x16xf32> -> vector<8x16xf32>
    %7 = arith.truncf %6 : vector<8x16xf32> to vector<8x16xbf16>
    %8 = arith.truncf %2 : vector<16x32xf32> to vector<16x32xbf16>
    %cst_6 = arith.constant dense<0.000000e+00> : vector<8x32xf32>
    %9 = tpu.matmul %7, %8, %cst_6 {dimension_numbers = #tpu.dot_dimension_numbers<[1], [0], [0], [1], [0, 0, 1, 1], [], []>} : vector<8x16xbf16>, vector<16x32xbf16>, vector<8x32xf32> -> vector<8x32xf32>
    %10 = vector.broadcast %3 : vector<1x32xf32> to vector<8x32xf32>
    %11 = arith.addf %9, %10 : vector<8x32xf32>
    %cst_7 = arith.constant 0.000000e+00 : f32
    %12 = vector.broadcast %cst_7 : f32 to vector<8x32xf32>
    %13 = arith.maximumf %11, %12 : vector<8x32xf32>
    %c24 = arith.constant 24 : index
    %c0_8 = arith.constant 0 : index
    %14 = vector.load %arg2[%c24, %c0_8] : memref<80x128xf32, #tpu.memory_space<vmem>>, vector<32x32xf32>
    %c56 = arith.constant 56 : index
    %c0_9 = arith.constant 0 : index
    %15 = vector.load %arg2[%c56, %c0_9] : memref<80x128xf32, #tpu.memory_space<vmem>>, vector<1x32xf32>
    %16 = arith.truncf %13 : vector<8x32xf32> to vector<8x32xbf16>
    %17 = arith.truncf %14 : vector<32x32xf32> to vector<32x32xbf16>
    %cst_10 = arith.constant dense<0.000000e+00> : vector<8x32xf32>
    %18 = tpu.matmul %16, %17, %cst_10 {dimension_numbers = #tpu.dot_dimension_numbers<[1], [0], [0], [1], [0, 0, 1, 1], [], []>} : vector<8x32xbf16>, vector<32x32xbf16>, vector<8x32xf32> -> vector<8x32xf32>
    %19 = arith.truncf %0 : vector<8x8xf32> to vector<8x8xbf16>
    %20 = arith.truncf %18 : vector<8x32xf32> to vector<8x32xbf16>
    %cst_11 = arith.constant dense<0.000000e+00> : vector<8x32xf32>
    %21 = tpu.matmul %19, %20, %cst_11 {dimension_numbers = #tpu.dot_dimension_numbers<[1], [0], [0], [1], [0, 0, 1, 1], [], []>} : vector<8x8xbf16>, vector<8x32xbf16>, vector<8x32xf32> -> vector<8x32xf32>
    %22 = vector.broadcast %15 : vector<1x32xf32> to vector<8x32xf32>
    %23 = arith.addf %21, %22 : vector<8x32xf32>
    %cst_12 = arith.constant 0.000000e+00 : f32
    %24 = vector.broadcast %cst_12 : f32 to vector<8x32xf32>
    %25 = arith.maximumf %23, %24 : vector<8x32xf32>
    %c64 = arith.constant 64 : index
    %c0_13 = arith.constant 0 : index
    %26 = vector.load %arg2[%c64, %c0_13] : memref<80x128xf32, #tpu.memory_space<vmem>>, vector<1x32xf32>
    %c72 = arith.constant 72 : index
    %c0_14 = arith.constant 0 : index
    %27 = vector.load %arg2[%c72, %c0_14] : memref<80x128xf32, #tpu.memory_space<vmem>>, vector<1x1xf32>
    %28 = arith.truncf %0 : vector<8x8xf32> to vector<8x8xbf16>
    %29 = arith.truncf %25 : vector<8x32xf32> to vector<8x32xbf16>
    %cst_15 = arith.constant dense<0.000000e+00> : vector<8x32xf32>
    %30 = tpu.matmul %28, %29, %cst_15 {dimension_numbers = #tpu.dot_dimension_numbers<[1], [0], [0], [1], [0, 0, 1, 1], [], []>} : vector<8x8xbf16>, vector<8x32xbf16>, vector<8x32xf32> -> vector<8x32xf32>
    %31 = vector.broadcast %26 : vector<1x32xf32> to vector<8x32xf32>
    %32 = arith.mulf %30, %31 : vector<8x32xf32>
    %cst_16 = arith.constant dense<0.000000e+00> : vector<8xf32>
    %33 = vector.multi_reduction <add>, %32, %cst_16 [1] : vector<8x32xf32> to vector<8xf32>
    %34 = vector.shape_cast %33 : vector<8xf32> to vector<8x1xf32>
    %35 = tpu.iota {dimensions = array<i32: 0>} : vector<8x8xi32>
    %36 = tpu.iota {dimensions = array<i32: 1>} : vector<8x8xi32>
    %37 = arith.cmpi eq, %35, %36 : vector<8x8xi32>
    %cst_17 = arith.constant 0.000000e+00 : f32
    %38 = vector.shape_cast %34 : vector<8x1xf32> to vector<8x1xf32>
    %39 = vector.broadcast %38 : vector<8x1xf32> to vector<8x8xf32>
    %40 = vector.broadcast %cst_17 : f32 to vector<8x8xf32>
    %41 = arith.select %37, %39, %40 : vector<8x8xi1>, vector<8x8xf32>
    %cst_18 = arith.constant dense<0.000000e+00> : vector<8xf32>
    %42 = vector.multi_reduction <add>, %41, %cst_18 [0] : vector<8x8xf32> to vector<8xf32>
    %43 = vector.shape_cast %42 : vector<8xf32> to vector<1x8xf32>
    %44 = vector.broadcast %27 : vector<1x1xf32> to vector<1x8xf32>
    %45 = arith.addf %43, %44 : vector<1x8xf32>
    %cst_19 = arith.constant 0.000000e+00 : f32
    %46 = vector.broadcast %cst_19 : f32 to vector<1x8xf32>
    %47 = arith.maximumf %45, %46 : vector<1x8xf32>
    %c0_20 = arith.constant 0 : index
    %c0_21 = arith.constant 0 : index
    %48 = vector.load %arg3[%c0_20, %c0_21] : memref<1x8xf32, #tpu.memory_space<vmem>>, vector<1x8xf32>
    tpu.vector_store %arg3[%c0_20, %c0_21], %47 {strides = array<i32>} : memref<1x8xf32, #tpu.memory_space<vmem>>, vector<1x8xf32>,
    return
  }
}

</mosaic_0001>

<bundles_post_ra>
// kernel: tpu_custom_call.1
= control target key start
LH: loop header
LB: loop body
LE: loop exit
PB: predicated region body
PF: predicated region fallthrough
CT: control target
= control target key end

     0   :  { %8 = vsyncpa [#allocation3], 0  ;;  %s598_s0 = inlined_call_operand.hbm [shape: f32[8,16], index: 0, kind: input, shape index: {}]   ;;  %s599_s1 = inlined_call_operand.hbm [shape: f32[8,8], index: 1, kind: input, shape index: {}]   ;;  %s600_s2 = inlined_call_operand.hbm [shape: f32[80,128], index: 2, kind: input, shape index: {}]   ;;  %s601_s3 = inlined_call_operand.hbm [shape: f32[1,8], index: 3, kind: output, shape index: {}]  }
   0x1   :  { %9 = vsyncpa [#allocation6], 0 }
   0x2   :  { %10 = vsyncpa [#allocation4], 0  ;;  %s507_s12 = smov [#allocation5]   ;;  %s508_s14 = smov [#allocation2]  }
   0x3   :  { %s27_s13 = sshll.u32 %s507_s12, 4  ;;  %s17_s15 = sshll.u32 %s508_s14, 4  ;;  %s28_s13 = int_to_ptr.vmem [resolvable:$true] %s27_s13  ;;  %s18_s15 = int_to_ptr.vmem [resolvable:$true] %s17_s15 }
   0x4   :  { %s413_s18 = scalar_lea.hbm %s599_s1, 128 }
   0x5   :  { %p414_p0 = scmp.ne.s32.totalorder %s599_s1, %s413_s18  ;;  %p417_p1 = scmp.lt.u32.totalorder %s413_s18, %s599_s1 }
   0x7   :  { %p419_p2 = pnand %p417_p1, %p414_p0 }
   0x9   :  { %422 = shalt.err (!%p419_p2)
}
   0xa   :  { %s423_s23 = scalar_lea.vmem %s28_s13, 128  ;;  %p428_p4 = scmp.lt.s32.totalorder %s28_s13, %s28_s13 }
   0xb   :  { %p424_p3 = scmp.ne.s32.totalorder %s28_s13, %s423_s23  ;;  %p429_p5 = scmp.lt.s32.totalorder %s423_s23, %s423_s23 }
   0xd   :  { %p430_p6 = por %p429_p5, %p428_p4 }
   0xf   :  { %p431_p7 = pnand %p430_p6, %p424_p3 }
  0x11   :  { %434 = shalt.err (!%p431_p7)
}
  0x12   :  { %30 = dma.hbm_to_vmem [thread:$0]  %s599_s1, 128, %s28_s13, [#allocation6]  }
  0x13   :  { %s435_s28 = scalar_lea.hbm %s598_s0, 128 }
  0x14   :  { %p436_p8 = scmp.ne.s32.totalorder %s598_s0, %s435_s28  ;;  %p439_p9 = scmp.lt.u32.totalorder %s435_s28, %s598_s0 }
  0x16   :  { %p441_p10 = pnand %p439_p9, %p436_p8 }
  0x18   :  { %444 = shalt.err (!%p441_p10)
}
  0x19   :  { %s445_s6 = scalar_lea.vmem %s18_s15, 128  ;;  %p450_p12 = scmp.lt.s32.totalorder %s18_s15, %s18_s15 }
  0x1a   :  { %p446_p11 = scmp.ne.s32.totalorder %s18_s15, %s445_s6  ;;  %p451_p13 = scmp.lt.s32.totalorder %s445_s6, %s445_s6 }
  0x1c   :  { %p452_p0 = por %p451_p13, %p450_p12 }
  0x1e   :  { %p453_p1 = pnand %p452_p0, %p446_p11 }
  0x20   :  { %456 = shalt.err (!%p453_p1)
}
  0x21   :  { %20 = dma.hbm_to_vmem [thread:$0]  %s598_s0, 128, %s18_s15, [#allocation3]  }
  0x22   :  { %s509_s8 = smov [#allocation7]   ;;  %s457_s12 = scalar_lea.hbm %s600_s2, 1280 }
  0x23   :  { %s36_s9 = sshll.u32 %s509_s8, 4  ;;  %p458_p2 = scmp.ne.s32.totalorder %s600_s2, %s457_s12  ;;  %s37_s9 = int_to_ptr.vmem [resolvable:$true] %s36_s9 }
  0x24   :  { %p461_p3 = scmp.lt.u32.totalorder %s457_s12, %s600_s2 }
  0x26   :  { %p463_p4 = pnand %p461_p3, %p458_p2 }
  0x28   :  { %466 = shalt.err (!%p463_p4)
}
  0x29   :  { %s467_s18 = scalar_lea.vmem %s37_s9, 1280  ;;  %p472_p6 = scmp.lt.s32.totalorder %s37_s9, %s37_s9 }
  0x2a   :  { %p468_p5 = scmp.ne.s32.totalorder %s37_s9, %s467_s18  ;;  %p473_p7 = scmp.lt.s32.totalorder %s467_s18, %s467_s18 }
  0x2c   :  { %p474_p8 = por %p473_p7, %p472_p6 }
  0x2e   :  { %p475_p9 = pnand %p474_p8, %p468_p5 }
  0x30   :  { %478 = shalt.err (!%p475_p9)
}
  0x31   :  { %s510_s0 = smov 128   ;;  %s511_s15 = smov 8  }
  0x32   :  { %42 = dma.hbm_to_vmem [thread:$0]  %s600_s2, 1280, %s37_s9, [#allocation6], %s510_s0, %s510_s0, %s511_s15  }
  0x33   :  { %501 = dma.done.wait [#allocation3], 128  }
  0x34   :  { %502 = vsyncadd [#allocation3], 4294967168 }
  0x35   :  { %503 = dma.done.wait [#allocation6], 1408  }
  0x36   :  { %504 = vsyncadd [#allocation6], 4294965888  ;;  %v512_v0 = vmov 0.0   ;;  %vm513_vm0 = vmmov 0   ;;  %v54_v1 = vld [vmem:[#allocation2] sm:$0xff]  ;;  %vm64_vm1 = vcmask 1043456   ;;  %v314_v52 = vlaneseq }
  0x37   :  { %371 = vmatprep.subr.bf16.mxu0 %v512_v0  ;;  %373 = vmatprep.mubr.msk.bf16.mxu0 %vm513_vm0, %v512_v0  ;;  %v53_v2 = vld [vmem:[#allocation5] sm:$0xff]  ;;  %v59_v3 = vpack.c.bf16 %v54_v1, %v54_v1  ;;  %vm60_vm2 = vcmask 64512   ;;  %v55_v6 = vld [vmem:[#allocation7] sm:$0xff]  ;;  %v56_v7 = vld [vmem:[#allocation7 + $0x8] sm:$0xff]  ;;  %vm114_vm3 = vcmask 130048   ;;  %vm167_vm4 = vcmask 261120  }
  0x38   :  { %377 = vmatprep.subr.bf16.mxu1 %v512_v0  ;;  %379 = vmatprep.mubr.msk.bf16.mxu1 %vm513_vm0, %v512_v0  ;;  %v58_v5 = vpack.c.bf16 %v53_v2, %v53_v2  ;;  %v109_v8 = vpack.c.bf16 %v56_v7, %v55_v6  ;;  %v159_v14 = vld [vmem:[#allocation7 + $0x18] sm:$0xff]  ;;  %v160_v15 = vld [vmem:[#allocation7 + $0x20] sm:$0xff]  ;;  %v161_v17 = vld [vmem:[#allocation7 + $0x28] sm:$0xff]  ;;  %v514_v43 = vmov 0   ;;  %v315_v53 = vshrl.u32 %v314_v52, 7  ;;  %s515_s2 = smov [#allocation8]  }
  0x39   :  { %v66_v4 = vsel %vm64_vm1, %v59_v3, 0  ;;  %v165_v16 = vpack.c.bf16 %v160_v15, %v159_v14  ;;  %v162_v18 = vld [vmem:[#allocation7 + $0x30] sm:$0xff]  ;;  %v356_v34 = vld [vmem:[#allocation7 + $0x38] ss:$0 sm:$0xff]  ;;  %412 = vset.pattern.permute.xlu0 %v514_v43  ;;  %v359_v44 = vld [vmem:[#allocation7 + $0x40] ss:$0 sm:$0xff] }
  0x3a   :  { %372 = vmatpush3.bf16.msra.mxu0 %v66_v4  ;;  %378 = vmatpush3.bf16.msra.mxu1 %v109_v8  ;;  %v166_v19 = vpack.c.bf16 %v162_v18, %v161_v17  ;;  %v353_v20 = vld [vmem:[#allocation7 + $0x10] ss:$0 sm:$0xff]  ;;  %v261_v51 = vld [vmem:[#allocation7 + $0x48] sm:$0x1]  ;;  %v317_v54 = vand.u32 127, %v314_v52  ;;  %s342_s21 = sshll.u32 %s515_s2, 4  ;;  %s343_s21 = int_to_ptr.vmem [resolvable:$true] %s342_s21 }
  0x3b   :  { %383 = vmatprep.subr.bf16.mxu0 %v512_v0  ;;  %391 = vmatprep.subr.bf16.mxu1 %v512_v0  ;;  %vm334_vm6 = vcmask 57344   ;;  %s479_s22 = scalar_lea.vmem %s343_s21, 16  ;;  %s483_s23 = scalar_lea.vmem %s343_s21, 32 }
  0x3c   :  { %vm318_vm5 = vcmp.eq.s32.totalorder %v315_v53, %v317_v54  ;;  %p480_p10 = scmp.ne.s32.totalorder %s343_s21, %s479_s22  ;;  %p484_p11 = scmp.lt.s32.totalorder %s343_s21, %s343_s21 }
  0x3d   :  { %374 = vmatmul.mubr.msk.bf16.vlgmr.msra.gmra.mrb[0].mxu0 %vm60_vm2, %v58_v5  ;;  %p485_p12 = scmp.lt.s32.totalorder %s483_s23, %s479_s22 }
  0x3e   :  { %387 = vmatprep.mubr.msk.bf16.mxu0 %vm513_vm0, %v512_v0  ;;  %384 = vmatpush3.bf16.msra.mxu0 %v165_v16 }
  0x3f   :  { %385 = vmatprep.subr.bf16.mxu0 %v512_v0  ;;  %p486_p13 = por %p485_p12, %p484_p11 }
  0x41   :  { %p487_p0 = pnand %p486_p13, %p480_p10 }
  0x42   :  { %386 = vmatpush3.bf16.msra.mxu0 %v166_v19 }
  0x43   :  { %397 = vmatprep.subr.bf16.mxu0 %v512_v0 }
 0x110   :  { %v102_v9 = vpop.f32.mrb[0].mxu0 }
 0x111   :  { %v108_v10 = vpack.c.bf16 %v102_v9, %v102_v9  ;;  %v375_v11 = vpop.f32.mrb[1].mxu0 }
 0x112   :  { %v105_v12 = vpop.f32.mrb[2].mxu0 }
 0x113   :  { %v376_v13 = vpop.f32.mrb[3].mxu0  ;;  %380 = vmatmul.mubr.msk.bf16.vlgmr.msra.gmra.mrb[0].mxu1 %vm114_vm3, %v108_v10 }
 0x114   :  { %393 = vmatprep.mubr.msk.bf16.mxu1 %vm513_vm0, %v512_v0 }
 0x1e6   :  { %v152_v21 = vpop.f32.mrb[0].mxu1 }
 0x1e7   :  { %v153_v22 = vadd.f32 %v353_v20, %v152_v21  ;;  %v381_v23 = vpop.f32.mrb[1].mxu1 }
 0x1e8   :  { %v155_v24 = vpop.f32.mrb[2].mxu1 }
 0x1e9   :  { %v158_v25 = vmax.f32 %v153_v22, 0.0  ;;  %v382_v26 = vpop.f32.mrb[3].mxu1 }
 0x1eb   :  { %v164_v27 = vpack.c.bf16 %v158_v25, %v158_v25 }
 0x1ed   :  { %388 = vmatmul.mubr.msk.bf16.vlgmr.msra.gmra.mrb[4].mxu0 %vm167_vm4, %v164_v27 }
 0x1ee   :  { %399 = vmatprep.mubr.msk.bf16.mxu0 %vm513_vm0, %v512_v0 }
 0x2c0   :  { %v205_v28 = vpop.f32.mrb[4].mxu0 }
 0x2c1   :  { %v211_v29 = vpack.c.bf16 %v205_v28, %v205_v28  ;;  %v389_v30 = vpop.f32.mrb[5].mxu0 }
 0x2c2   :  { %v208_v31 = vpop.f32.mrb[6].mxu0 }
 0x2c3   :  { %v217_v32 = vsel %vm64_vm1, %v211_v29, 0  ;;  %v390_v33 = vpop.f32.mrb[7].mxu0 }
 0x2c4   :  { %392 = vmatpush3.bf16.msra.mxu1 %v217_v32 }
 0x2c7   :  { %394 = vmatmul.mubr.msk.bf16.vlgmr.msra.gmra.mrb[4].mxu1 %vm60_vm2, %v58_v5 }
 0x39a   :  { %v253_v35 = vpop.f32.mrb[4].mxu1 }
 0x39b   :  { %v254_v36 = vadd.f32 %v356_v34, %v253_v35  ;;  %v395_v37 = vpop.f32.mrb[5].mxu1 }
 0x39c   :  { %v256_v38 = vpop.f32.mrb[6].mxu1 }
 0x39d   :  { %v259_v39 = vmax.f32 %v254_v36, 0.0  ;;  %v396_v40 = vpop.f32.mrb[7].mxu1 }
 0x39f   :  { %v262_v41 = vpack.c.bf16 %v259_v39, %v259_v39 }
 0x3a1   :  { %v264_v42 = vsel %vm64_vm1, %v262_v41, 0 }
 0x3a2   :  { %398 = vmatpush3.bf16.msra.mxu0 %v264_v42 }
 0x3a5   :  { %400 = vmatmul.mubr.msk.bf16.vlgmr.msra.gmra.mrb[8].mxu0 %vm60_vm2, %v58_v5 }
 0x478   :  { %v300_v45 = vpop.f32.mrb[8].mxu0 }
 0x479   :  { %v310_v46 = vmul.f32 %v359_v44, %v300_v45  ;;  %v401_v47 = vpop.f32.mrb[9].mxu0 }
 0x47a   :  { %v303_v48 = vpop.f32.mrb[10].mxu0 }
 0x47b   :  { %v311_v49 = vsel %vm167_vm4, %v310_v46, 0.0  ;;  %v402_v50 = vpop.f32.mrb[11].mxu0 }
 0x47c   :  { %312 = vadd.xlane.f32.xlu0 %v311_v49 }
 0x492   :  { %329 = vperm.xlu0 %412, %v261_v51  }
 0x509   :  { %v313_v55 = vpop.xlane.xlu0 %312 }
 0x50a   :  { %v319_v56 = vsel %vm318_vm5, %v313_v55, 0.0 }
 0x50b   :  { %v320_v57 = vsel %vm60_vm2, %v319_v56, 0.0 }
 0x50c   :  { %v321_v58 = vrot.slane %v320_v57, 4 }
 0x50e   :  { %v322_v59 = vadd.f32 %v321_v58, %v320_v57 }
 0x510   :  { %v323_v60 = vrot.slane %v322_v59, 2 }
 0x511   :  { %v330_v63 = vpop.permute.xlu0 %329 }
 0x512   :  { %v324_v61 = vadd.f32 %v323_v60, %v322_v59 }
 0x514   :  { %v325_v62 = vrot.slane %v324_v61, 1 }
 0x516   :  { %v326_v0 = vadd.f32 %v325_v62, %v324_v61 }
 0x518   :  { %v332_v1 = vadd.f32 %v330_v63, %v326_v0 }
 0x51a   :  { %v333_v2 = vmax.f32 %v332_v1, 0.0 }
 0x51c   :  { %335 = vst.msk [vmem:[#allocation8] sm:$0x1] %vm334_vm6, %v333_v2 }
 0x51d   :  { %490 = shalt.err (!%p487_p0)
}
 0x51e   :  { %s491_s26 = scalar_lea.hbm %s601_s3, 16 }
 0x51f   :  { %p492_p1 = scmp.ne.s32.totalorder %s601_s3, %s491_s26  ;;  %p495_p2 = scmp.lt.u32.totalorder %s491_s26, %s601_s3 }
 0x521   :  { %p497_p3 = pnand %p495_p2, %p492_p1 }
 0x523   :  { %500 = shalt.err (!%p497_p3)
}
 0x524   :  { %345 = dma.vmem_to_hbm [thread:$0]  %s343_s21, 16, %s601_s3, [#allocation4]  }
 0x525   :  { %505 = dma.done.wait [#allocation4], 16  }
 0x526   :  { %506 = vsyncadd [#allocation4], 4294967280 }
 0x527   :  { %349 = vsyncpa [#allocation3], 1 }
 0x528   :  { %350 = vsyncpa [#allocation6], 1 }
 0x529   :  { %351 = vsyncpa [#allocation4], 1 }

</bundles_post_ra>
